<compile_context>
chip_gen: v6e
topology: v6e:2x2x1
jax: 0.10.0
libtpu: 0.0.40
codegen_flags: <defaults>
</compile_context>

<pallas_src>
import jax
import jax.numpy as jnp
from jax.experimental import pallas as pl
from jax.experimental.pallas import tpu as pltpu

HIDDEN_PAD = 128   # hidden dim 50 zero-padded to a full 128-lane tile
CLASS_PAD = 128    # num_classes 10 zero-padded so the output store is lane-dense


def _round_up(n, m):
    return ((n + m - 1) // m) * m


def mlp_kernel(x_ref, w1_ref, b1_ref, w2_ref, b2_ref, o_ref):
    # fc1: bf16 MXU matmul, f32 accumulation, f32 bias + ReLU.
    h = jnp.dot(x_ref[...], w1_ref[...], preferred_element_type=jnp.float32)
    h = jnp.maximum(h + b1_ref[...], 0.0)                       # (TB, 128) f32
    # fc2: cast activations back to bf16 for the MXU, accumulate in f32.
    y = jnp.dot(h.astype(jnp.bfloat16), w2_ref[...],
                preferred_element_type=jnp.float32)
    o_ref[...] = y + b2_ref[...]                                # (TB, 128) f32


def nn_forward(x, w1, b1, w2, b2, *, block_b=512):
    """x: (B, 784) f32; w1: (784, 50); b1: (1, 50); w2: (50, 10); b2: (1, 10)."""
    B, in_features = x.shape
    hidden = w1.shape[1]
    num_classes = w2.shape[1]

    # ---- lane-dense, bf16 parameters (zero-padding does not change results) --
    w1p = jnp.zeros((in_features, HIDDEN_PAD), jnp.bfloat16)
    w1p = w1p.at[:, :hidden].set(w1.astype(jnp.bfloat16))
    b1p = jnp.zeros((1, HIDDEN_PAD), jnp.float32)
    b1p = b1p.at[:, :hidden].set(b1.astype(jnp.float32))
    w2p = jnp.zeros((HIDDEN_PAD, CLASS_PAD), jnp.bfloat16)
    w2p = w2p.at[:hidden, :num_classes].set(w2.astype(jnp.bfloat16))
    b2p = jnp.zeros((1, CLASS_PAD), jnp.float32)
    b2p = b2p.at[:, :num_classes].set(b2.astype(jnp.float32))

    # ---- batch tiling: TB rows per grid step, padded batch ------------------
    tb = min(block_b, _round_up(B, 8))          # sublane-aligned batch tile
    b_padded = _round_up(B, tb)
    xb = x.astype(jnp.bfloat16)
    if b_padded != B:
        xb = jnp.pad(xb, ((0, b_padded - B), (0, 0)))

    grid = (b_padded // tb,)

    out_padded = pl.pallas_call(
        mlp_kernel,
        out_shape=jax.ShapeDtypeStruct((b_padded, CLASS_PAD), jnp.float32),
        grid=grid,
        in_specs=[
            pl.BlockSpec((tb, in_features), lambda i: (i, 0)),        # x tile
            pl.BlockSpec((in_features, HIDDEN_PAD), lambda i: (0, 0)),  # w1 resident
            pl.BlockSpec((1, HIDDEN_PAD), lambda i: (0, 0)),            # b1 resident
            pl.BlockSpec((HIDDEN_PAD, CLASS_PAD), lambda i: (0, 0)),    # w2 resident
            pl.BlockSpec((1, CLASS_PAD), lambda i: (0, 0)),             # b2 resident
        ],
        out_specs=pl.BlockSpec((tb, CLASS_PAD), lambda i: (i, 0)),
        compiler_params=pltpu.CompilerParams(
            dimension_semantics=("parallel",)),   # megacore sharding on v7x
    )(xb, w1p, b1p, w2p, b2p)

    return out_padded[:B, :num_classes]


def init_params(key, input_size, hidden, num_classes):
    # Deterministic init mirroring nn.Linear's uniform(-1/sqrt(fan_in), 1/sqrt(fan_in)).
    k1, k2, k3, k4 = jax.random.split(key, 4)
    bound1 = 1.0 / jnp.sqrt(input_size)
    bound2 = 1.0 / jnp.sqrt(hidden)
    # Stored as (in, out): transpose of PyTorch's (out, in) weight layout.
    w1 = jax.random.uniform(k1, (input_size, hidden), jnp.float32, -bound1, bound1)
    b1 = jax.random.uniform(k2, (1, hidden), jnp.float32, -bound1, bound1)
    w2 = jax.random.uniform(k3, (hidden, num_classes), jnp.float32, -bound2, bound2)
    b2 = jax.random.uniform(k4, (1, num_classes), jnp.float32, -bound2, bound2)
    return w1, b1, w2, b2


if __name__ == "__main__":
    input_size = 784
    hidden = 50
    num_classes = 10
    batch = 64

    key = jax.random.PRNGKey(0)
    kx, kp = jax.random.split(key)
    x = jax.random.normal(kx, (batch, input_size), jnp.float32)
    w1, b1, w2, b2 = init_params(kp, input_size, hidden, num_classes)

    out = nn_forward(x, w1, b1, w2, b2)
    out = jax.block_until_ready(out)
    assert out.shape == (batch, num_classes)

    # Reference with the same bf16-input / f32-accumulate numerics as the kernel.
    xb = x.astype(jnp.bfloat16)
    w1b = w1.astype(jnp.bfloat16)
    w2b = w2.astype(jnp.bfloat16)
    h_ref = jnp.maximum(
        jnp.dot(xb, w1b, preferred_element_type=jnp.float32) + b1, 0.0)
    ref = jnp.dot(h_ref.astype(jnp.bfloat16), w2b,
                  preferred_element_type=jnp.float32) + b2
    assert jnp.allclose(out, ref, atol=1e-3, rtol=1e-3)

    print("KERNEL_OK")
</pallas_src>

<mosaic_0001>
module attributes {stable_mosaic.version = 11 : i64} {
  func.func @mlp_kernel(%arg0: i32, %arg1: memref<64x784xbf16, #tpu.memory_space<vmem>>, %arg2: memref<784x128xbf16, #tpu.memory_space<vmem>>, %arg3: memref<1x128xf32, #tpu.memory_space<vmem>>, %arg4: memref<128x128xbf16, #tpu.memory_space<vmem>>, %arg5: memref<1x128xf32, #tpu.memory_space<vmem>>, %arg6: memref<64x128xf32, #tpu.memory_space<vmem>>) attributes {dimension_semantics = [#tpu.dimension_semantics<parallel>], iteration_bounds = array<i64: 1>, scalar_prefetch = 0 : i64, scratch_operands = 0 : i64, tpu.core_type = #tpu.core_type<tc>, window_params = [{transform_indices = @transform_0, window_bounds = array<i64: 64, 784>}, {pipeline_mode = #tpu.pipeline_mode<synchronous>, transform_indices = @transform_1, window_bounds = array<i64: 784, 128>}, {pipeline_mode = #tpu.pipeline_mode<synchronous>, transform_indices = @transform_2, window_bounds = array<i64: 1, 128>}, {pipeline_mode = #tpu.pipeline_mode<synchronous>, transform_indices = @transform_3, window_bounds = array<i64: 128, 128>}, {pipeline_mode = #tpu.pipeline_mode<synchronous>, transform_indices = @transform_4, window_bounds = array<i64: 1, 128>}, {transform_indices = @transform_5, window_bounds = array<i64: 64, 128>}]} {
    %c0 = arith.constant 0 : index
    %c0_0 = arith.constant 0 : index
    %0 = vector.load %arg1[%c0, %c0_0] : memref<64x784xbf16, #tpu.memory_space<vmem>>, vector<64x784xbf16>
    %c0_1 = arith.constant 0 : index
    %c0_2 = arith.constant 0 : index
    %1 = vector.load %arg2[%c0_1, %c0_2] : memref<784x128xbf16, #tpu.memory_space<vmem>>, vector<784x128xbf16>
    %cst = arith.constant dense<0.000000e+00> : vector<64x128xf32>
    %2 = tpu.matmul %0, %1, %cst {dimension_numbers = #tpu.dot_dimension_numbers<[1], [0], [0], [1], [0, 0, 1, 1], [], []>} : vector<64x784xbf16>, vector<784x128xbf16>, vector<64x128xf32> -> vector<64x128xf32>
    %c0_3 = arith.constant 0 : index
    %c0_4 = arith.constant 0 : index
    %3 = vector.load %arg3[%c0_3, %c0_4] : memref<1x128xf32, #tpu.memory_space<vmem>>, vector<1x128xf32>
    %4 = vector.broadcast %3 : vector<1x128xf32> to vector<64x128xf32>
    %5 = arith.addf %2, %4 : vector<64x128xf32>
    %cst_5 = arith.constant 0.000000e+00 : f32
    %6 = vector.broadcast %cst_5 : f32 to vector<64x128xf32>
    %7 = arith.maximumf %5, %6 : vector<64x128xf32>
    %8 = arith.truncf %7 : vector<64x128xf32> to vector<64x128xbf16>
    %c0_6 = arith.constant 0 : index
    %c0_7 = arith.constant 0 : index
    %9 = vector.load %arg4[%c0_6, %c0_7] : memref<128x128xbf16, #tpu.memory_space<vmem>>, vector<128x128xbf16>
    %cst_8 = arith.constant dense<0.000000e+00> : vector<64x128xf32>
    %10 = tpu.matmul %8, %9, %cst_8 {dimension_numbers = #tpu.dot_dimension_numbers<[1], [0], [0], [1], [0, 0, 1, 1], [], []>} : vector<64x128xbf16>, vector<128x128xbf16>, vector<64x128xf32> -> vector<64x128xf32>
    %c0_9 = arith.constant 0 : index
    %c0_10 = arith.constant 0 : index
    %11 = vector.load %arg5[%c0_9, %c0_10] : memref<1x128xf32, #tpu.memory_space<vmem>>, vector<1x128xf32>
    %12 = vector.broadcast %11 : vector<1x128xf32> to vector<64x128xf32>
    %13 = arith.addf %10, %12 : vector<64x128xf32>
    %c0_11 = arith.constant 0 : index
    %c0_12 = arith.constant 0 : index
    %14 = vector.load %arg6[%c0_11, %c0_12] : memref<64x128xf32, #tpu.memory_space<vmem>>, vector<64x128xf32>
    tpu.vector_store %arg6[%c0_11, %c0_12], %13 {strides = array<i32>} : memref<64x128xf32, #tpu.memory_space<vmem>>, vector<64x128xf32>,
    return
  }
  func.func @transform_0(%arg0: i32) -> (i32, i32) {
    %c0_i32 = arith.constant 0 : i32
    %c0_i32_0 = arith.constant 0 : i32
    return %arg0, %c0_i32 : i32, i32
  }
  func.func @transform_1(%arg0: i32) -> (i32, i32) {
    %c0_i32 = arith.constant 0 : i32
    %c0_i32_0 = arith.constant 0 : i32
    %c0_i32_1 = arith.constant 0 : i32
    return %c0_i32, %c0_i32_0 : i32, i32
  }
  func.func @transform_2(%arg0: i32) -> (i32, i32) {
    %c0_i32 = arith.constant 0 : i32
    %c0_i32_0 = arith.constant 0 : i32
    %c0_i32_1 = arith.constant 0 : i32
    return %c0_i32, %c0_i32_0 : i32, i32
  }
  func.func @transform_3(%arg0: i32) -> (i32, i32) {
    %c0_i32 = arith.constant 0 : i32
    %c0_i32_0 = arith.constant 0 : i32
    %c0_i32_1 = arith.constant 0 : i32
    return %c0_i32, %c0_i32_0 : i32, i32
  }
  func.func @transform_4(%arg0: i32) -> (i32, i32) {
    %c0_i32 = arith.constant 0 : i32
    %c0_i32_0 = arith.constant 0 : i32
    %c0_i32_1 = arith.constant 0 : i32
    return %c0_i32, %c0_i32_0 : i32, i32
  }
  func.func @transform_5(%arg0: i32) -> (i32, i32) {
    %c0_i32 = arith.constant 0 : i32
    %c0_i32_0 = arith.constant 0 : i32
    return %arg0, %c0_i32 : i32, i32
  }
}

</mosaic_0001>

<bundles_post_ra>
// kernel: tpu_custom_call.1
= control target key start
LH: loop header
LB: loop body
LE: loop exit
PB: predicated region body
PF: predicated region fallthrough
CT: control target
= control target key end

     0   :  { %10 = vsyncpa [#allocation3], 0  ;;  %s1648_s0 = inlined_call_operand.hbm [shape: bf16[64,784], index: 0, kind: input, shape index: {}]   ;;  %s1649_s1 = inlined_call_operand.hbm [shape: bf16[784,128], index: 1, kind: input, shape index: {}]   ;;  %s1650_s2 = inlined_call_operand.vmem [shape: f32[1,128], index: 2, kind: input, shape index: {}]   ;;  %s1651_s3 = inlined_call_operand.hbm [shape: bf16[128,128], index: 3, kind: input, shape index: {}]   ;;  %s1652_s4 = inlined_call_operand.vmem [shape: f32[1,128], index: 4, kind: input, shape index: {}]   ;;  %s1653_s5 = inlined_call_operand.hbm [shape: f32[64,128], index: 5, kind: output, shape index: {}]  }
   0x1   :  { %11 = vsyncpa [#allocation6], 0 }
   0x2   :  { %12 = vsyncpa [#allocation4], 0  ;;  %s1552_s18 = smov [#allocation5]  }
   0x3   :  { %s30_s19 = sshll.u32 %s1552_s18, 4  ;;  %s31_s19 = int_to_ptr.vmem [resolvable:$true] %s30_s19 }
   0x4   :  { %s1474_s20 = scalar_lea.vmem %s31_s19, 6272  ;;  %p1479_p1 = scmp.lt.s32.totalorder %s31_s19, %s31_s19 }
   0x5   :  { %p1475_p0 = scmp.ne.s32.totalorder %s31_s19, %s1474_s20  ;;  %p1480_p2 = scmp.lt.s32.totalorder %s1474_s20, %s1474_s20 }
   0x7   :  { %p1481_p3 = por %p1480_p2, %p1479_p1 }
   0x9   :  { %p1482_p4 = pnand %p1481_p3, %p1475_p0 }
   0xb   :  { %1485 = shalt.err (!%p1482_p4)
}
   0xc   :  { %s1553_s21 = smov 64   ;;  %s1554_s22 = smov 4  }
   0xd   :  { %36 = dma.hbm_to_vmem [thread:$0]  %s1649_s1, 6272, %s31_s19, [#allocation6], %s1553_s21, %s1553_s21, %s1554_s22  }
   0xe   :  { %s1555_s25 = smov [#allocation2]  }
   0xf   :  { %s18_s26 = sshll.u32 %s1555_s25, 4  ;;  %s19_s26 = int_to_ptr.vmem [resolvable:$true] %s18_s26 }
  0x10   :  { %s1494_s27 = scalar_lea.vmem %s19_s26, 3584  ;;  %p1499_p6 = scmp.lt.s32.totalorder %s19_s26, %s19_s26 }
  0x11   :  { %p1495_p5 = scmp.ne.s32.totalorder %s19_s26, %s1494_s27  ;;  %p1500_p7 = scmp.lt.s32.totalorder %s1494_s27, %s1494_s27 }
  0x13   :  { %p1501_p8 = por %p1500_p7, %p1499_p6 }
  0x15   :  { %p1502_p9 = pnand %p1501_p8, %p1495_p5 }
  0x17   :  { %1505 = shalt.err (!%p1502_p9)
}
  0x18   :  { %s1556_s28 = smov 448   ;;  %s1557_s29 = smov 28  }
  0x19   :  { %24 = dma.hbm_to_vmem [thread:$0]  %s1648_s0, 3584, %s19_s26, [#allocation3], %s1556_s28, %s1556_s28, %s1557_s29  }
  0x1a   :  { %s1558_s7 = smov [#allocation7]  }
  0x1b   :  { %s44_s8 = sshll.u32 %s1558_s7, 4  ;;  %s45_s8 = int_to_ptr.vmem [resolvable:$true] %s44_s8 }
  0x1c   :  { %s1514_s1 = scalar_lea.vmem %s45_s8, 1024  ;;  %p1519_p11 = scmp.lt.s32.totalorder %s45_s8, %s45_s8 }
  0x1d   :  { %p1515_p10 = scmp.ne.s32.totalorder %s45_s8, %s1514_s1  ;;  %p1520_p12 = scmp.lt.s32.totalorder %s1514_s1, %s1514_s1 }
  0x1f   :  { %p1521_p13 = por %p1520_p12, %p1519_p11 }
  0x21   :  { %p1522_p0 = pnand %p1521_p13, %p1515_p10 }
  0x23   :  { %1525 = shalt.err (!%p1522_p0)
}
  0x24   :  { %50 = dma.hbm_to_vmem [thread:$0]  %s1651_s3, 1024, %s45_s8, [#allocation6], %s1553_s21, %s1553_s21, %s1554_s22  }
  0x25   :  { %1546 = dma.done.wait [#allocation3], 3584  }
  0x26   :  { %1547 = vsyncadd [#allocation3], 4294963712 }
  0x27   :  { %1548 = dma.done.wait [#allocation6], 7296  }
  0x28   :  { %1549 = vsyncadd [#allocation6], 4294960000  ;;  %v1369_v0 = vld [vmem:[#allocation5 + $0x78] sm:$0xff]   ;;  %v1373_v4 = vld [vmem:[#allocation5 + $0x70] sm:$0xff]   ;;  %vm634_vm0 = vcmask 130048   ;;  %s1559_s12 = smov [#allocation8]  }
  0x29   :  { %v1370_v1 = vld [vmem:[#allocation5 + $0x38] sm:$0xff]   ;;  %1172 = vmatprep.subr.bf16.mxu0 %v1369_v0  ;;  %v1374_v5 = vld [vmem:[#allocation5 + $0x30] sm:$0xff]   ;;  %v1377_v8 = vld [vmem:[#allocation5 + $0x68] sm:$0xff]   ;;  %s1068_s13 = sshll.u32 %s1559_s12, 4  ;;  %s1069_s13 = int_to_ptr.vmem [resolvable:$true] %s1068_s13 }
  0x2a   :  { %v1371_v2 = vld [vmem:[#allocation5 + $0xf8] sm:$0xff]   ;;  %1173 = vmatpush3.bf16.msra.mxu0 %v1370_v1  ;;  %v1375_v6 = vld [vmem:[#allocation5 + $0xf0] sm:$0xff]   ;;  %v1378_v9 = vld [vmem:[#allocation5 + $0x28] sm:$0xff]   ;;  %p1531_p2 = scmp.lt.s32.totalorder %s1069_s13, %s1069_s13 }
  0x2b   :  { %v1372_v3 = vld [vmem:[#allocation5 + $0xb8] sm:$0xff]   ;;  %1212 = vmatprep.subr.bf16.mxu1 %v1371_v2  ;;  %1174 = vmatprep.subr.bf16.mxu0 %v1373_v4  ;;  %v1376_v7 = vld [vmem:[#allocation5 + $0xb0] sm:$0xff]   ;;  %v1379_v10 = vld [vmem:[#allocation5 + $0xe8] sm:$0xff]  }
  0x2c   :  { %1213 = vmatpush3.bf16.msra.mxu1 %v1372_v3  ;;  %v1380_v11 = vld [vmem:[#allocation5 + $0xa8] sm:$0xff]   ;;  %v1381_v12 = vld [vmem:[#allocation5 + $0x60] sm:$0xff]   ;;  %v1385_v16 = vld [vmem:[#allocation5 + $0x58] sm:$0xff]  }
  0x2d   :  { %1214 = vmatprep.subr.bf16.mxu1 %v1375_v6  ;;  %v1382_v13 = vld [vmem:[#allocation5 + $0x20] sm:$0xff]   ;;  %v1386_v17 = vld [vmem:[#allocation5 + $0x18] sm:$0xff]   ;;  %v1389_v20 = vld [vmem:[#allocation5 + $0x50] sm:$0xff]  }
  0x2e   :  { %1175 = vmatpush3.bf16.msra.mxu0 %v1374_v5  ;;  %v1383_v14 = vld [vmem:[#allocation5 + $0xe0] sm:$0xff]   ;;  %v1387_v18 = vld [vmem:[#allocation5 + $0xd8] sm:$0xff]   ;;  %v1390_v21 = vld [vmem:[#allocation5 + $0x10] sm:$0xff]  }
  0x2f   :  { %1176 = vmatprep.subr.bf16.mxu0 %v1377_v8  ;;  %v1384_v15 = vld [vmem:[#allocation5 + $0xa0] sm:$0xff]   ;;  %v1388_v19 = vld [vmem:[#allocation5 + $0x98] sm:$0xff]   ;;  %v1391_v22 = vld [vmem:[#allocation5 + $0xd0] sm:$0xff]  }
  0x30   :  { %1215 = vmatpush3.bf16.msra.mxu1 %v1376_v7  ;;  %v1392_v23 = vld [vmem:[#allocation5 + $0x90] sm:$0xff]   ;;  %v1393_v24 = vld [vmem:[#allocation5 + $0x48] sm:$0xff]   ;;  %v1397_v28 = vld [vmem:[#allocation5 + $0x40] sm:$0xff]  }
  0x31   :  { %1216 = vmatprep.subr.bf16.mxu1 %v1379_v10  ;;  %v1394_v25 = vld [vmem:[#allocation5 + $0x8] sm:$0xff]   ;;  %v1398_v29 = vld [vmem:[#allocation5] sm:$0xff]   ;;  %v1404_v34 = vld [vmem:[#allocation5 + $0x178] sm:$0xff]  }
  0x32   :  { %1177 = vmatpush3.bf16.msra.mxu0 %v1378_v9  ;;  %v1395_v26 = vld [vmem:[#allocation5 + $0xc8] sm:$0xff]   ;;  %v1399_v30 = vld [vmem:[#allocation5 + $0xc0] sm:$0xff]   ;;  %v1408_v37 = vld [vmem:[#allocation5 + $0x138] sm:$0xff]  }
  0x33   :  { %1178 = vmatprep.subr.bf16.mxu0 %v1381_v12  ;;  %v1396_v27 = vld [vmem:[#allocation5 + $0x88] sm:$0xff]   ;;  %v1400_v31 = vld [vmem:[#allocation2] ss:$28 sps:$4 sm:$0xff]   ;;  %v1409_v38 = vld [vmem:[#allocation5 + $0x170] sm:$0xff]  }
  0x34   :  { %1217 = vmatpush3.bf16.msra.mxu1 %v1380_v11  ;;  %v1402_v32 = vld [vmem:[#allocation2 + $0x4] ss:$28 sps:$4 sm:$0xff]   ;;  %v1407_v36 = vld [vmem:[#allocation2 + $0xc] ss:$28 sps:$4 sm:$0xff]   ;;  %v1410_v39 = vld [vmem:[#allocation5 + $0x130] sm:$0xff]  }
  0x35   :  { %1218 = vmatprep.subr.bf16.mxu1 %v1383_v14  ;;  %v1403_v33 = vld [vmem:[#allocation5 + $0x80] sm:$0xff]   ;;  %679 = vmatprep.mubr.bf16.mxu0 %v1402_v32  ;;  %v1411_v40 = vld [vmem:[#allocation2 + $0x3c] ss:$28 sps:$4 sm:$0xff]   ;;  %v1414_v42 = vld [vmem:[#allocation5 + $0x168] sm:$0xff]  }
  0x36   :  { %1179 = vmatpush3.bf16.msra.mxu0 %v1382_v13  ;;  %v1405_v35 = vld [vmem:[#allocation2 + $0x8] ss:$28 sps:$4 sm:$0xff]   ;;  %744 = vmatprep.mubr.bf16.mxu1 %v1407_v36  ;;  %v1413_v41 = vld [vmem:[#allocation2 + $0x38] ss:$28 sps:$4 sm:$0xff]   ;;  %v1418_v45 = vld [vmem:[#allocation2 + $0x40] ss:$28 sps:$4 sm:$0xff]  }
  0x37   :  { %1180 = vmatprep.subr.bf16.mxu0 %v1385_v16  ;;  %v1415_v43 = vld [vmem:[#allocation2 + $0x44] ss:$28 sps:$4 sm:$0xff]   ;;  %v1417_v44 = vld [vmem:[#allocation5 + $0x128] sm:$0xff]   ;;  %v1421_v48 = vld [vmem:[#allocation2 + $0x74] ss:$28 sps:$4 sm:$0xff]  }
  0x38   :  { %1219 = vmatpush3.bf16.msra.mxu1 %v1384_v15  ;;  %v1419_v46 = vld [vmem:[#allocation5 + $0x160] sm:$0xff]   ;;  %v1423_v49 = vld [vmem:[#allocation2 + $0x70] ss:$28 sps:$4 sm:$0xff]   ;;  %v1424_v50 = vld [vmem:[#allocation5 + $0x158] sm:$0xff]  }
  0x39   :  { %1220 = vmatprep.subr.bf16.mxu1 %v1387_v18  ;;  %v1420_v47 = vld [vmem:[#allocation5 + $0x120] sm:$0xff]   ;;  %v1425_v51 = vld [vmem:[#allocation2 + $0x7c] ss:$28 sps:$4 sm:$0xff]   ;;  %v1430_v55 = vld [vmem:[#allocation5 + $0x150] sm:$0xff]  }
  0x3a   :  { %1181 = vmatpush3.bf16.msra.mxu0 %v1386_v17  ;;  %v1427_v52 = vld [vmem:[#allocation5 + $0x118] sm:$0xff]   ;;  %v1429_v54 = vld [vmem:[#allocation5 + $0x180] sm:$0xff]   ;;  %v1431_v56 = vld [vmem:[#allocation5 + $0x110] sm:$0xff]  }
  0x3b   :  { %1182 = vmatprep.subr.bf16.mxu0 %v1389_v20  ;;  %v1428_v53 = vld [vmem:[#allocation2 + $0x78] ss:$28 sps:$4 sm:$0xff]   ;;  %v1432_v57 = vld [vmem:[#allocation2 + $0xac] ss:$28 sps:$4 sm:$0xff]   ;;  %v1440_v63 = vld [vmem:[#allocation5 + $0x140] sm:$0xff]  }
  0x3c   :  { %1221 = vmatpush3.bf16.msra.mxu1 %v1388_v19  ;;  %v1434_v58 = vld [vmem:[#allocation2 + $0xa8] ss:$28 sps:$4 sm:$0xff]   ;;  %v1436_v60 = vld [vmem:[#allocation2 + $0xb4] ss:$28 sps:$4 sm:$0xff]   ;;  %v1454_v9 = vld [vmem:[#allocation2 + $0xc0] ss:$28 sps:$4 sm:$0xff]  }
  0x3d   :  { %1222 = vmatprep.subr.bf16.mxu1 %v1391_v22  ;;  %v1435_v59 = vld [vmem:[#allocation5 + $0x148] sm:$0xff]   ;;  %v1444_v0 = vld [vmem:[#allocation2 + $0x14] ss:$28 sps:$4 sm:$0xff]   ;;  %v1441_v2 = vld [vmem:[#allocation5 + $0x100] sm:$0xff]  }
  0x3e   :  { %1183 = vmatpush3.bf16.msra.mxu0 %v1390_v21  ;;  %v1438_v61 = vld [vmem:[#allocation5 + $0x108] sm:$0xff]   ;;  %v1445_v1 = vld [vmem:[#allocation2 + $0x18] ss:$28 sps:$4 sm:$0xff]   ;;  %v1450_v8 = vld [vmem:[#allocation2 + $0x84] ss:$28 sps:$4 sm:$0xff]  }
  0x3f   :  { %1184 = vmatprep.subr.bf16.mxu0 %v1393_v24  ;;  %v1439_v62 = vld [vmem:[#allocation2 + $0xb0] ss:$28 sps:$4 sm:$0xff]   ;;  %v1453_v6 = vld [vmem:[#allocation2 + $0x88] ss:$28 sps:$4 sm:$0xff]   ;;  %v1452_v10 = vld [vmem:[#allocation2 + $0x80] ss:$28 sps:$4 sm:$0xff]  }
  0x40   :  { %1223 = vmatpush3.bf16.msra.mxu1 %v1392_v23  ;;  %v1442_v3 = vld [vmem:[#allocation2 + $0x10] ss:$28 sps:$4 sm:$0xff]   ;;  %v1449_v7 = vld [vmem:[#allocation2 + $0x48] ss:$28 sps:$4 sm:$0xff]   ;;  %v1455_v11 = vld [vmem:[#allocation2 + $0xbc] ss:$28 sps:$4 sm:$0xff]  }
  0x41   :  { %1224 = vmatprep.subr.bf16.mxu1 %v1395_v26  ;;  %v1446_v4 = vld [vmem:[#allocation2 + $0x50] ss:$28 sps:$4 sm:$0xff]   ;;  %v1457_v12 = vld [vmem:[#allocation2 + $0xb8] ss:$28 sps:$4 sm:$0xff]   ;;  %v1458_v13 = vld [vmem:[#allocation7 + $0x38] sm:$0xff]  }
  0x42   :  { %1185 = vmatpush3.bf16.msra.mxu0 %v1394_v25  ;;  %v1447_v5 = vld [vmem:[#allocation2 + $0x4c] ss:$28 sps:$4 sm:$0xff]   ;;  %v1459_v14 = vld [vmem:[#allocation7 + $0x30] sm:$0xff]   ;;  %v1460_v15 = vld [vmem:[#allocation7 + $0x28] sm:$0xff]  }
  0x43   :  { %1186 = vmatprep.subr.bf16.mxu0 %v1397_v28  ;;  %v1461_v16 = vld [vmem:[#allocation7 + $0x20] sm:$0xff]   ;;  %v1462_v17 = vld [vmem:[#allocation7 + $0x18] sm:$0xff]   ;;  %v1463_v18 = vld [vmem:[#allocation7 + $0x10] sm:$0xff]  }
  0x44   :  { %1225 = vmatpush3.bf16.msra.mxu1 %v1396_v27  ;;  %v1464_v19 = vld [vmem:[#allocation7 + $0x8] sm:$0xff]   ;;  %v1465_v20 = vld [vmem:[#allocation7] sm:$0xff]  }
  0x45   :  { %1226 = vmatprep.subr.bf16.mxu1 %v1399_v30 }
  0x46   :  { %1187 = vmatpush3.bf16.msra.mxu0 %v1398_v29 }
  0x47   :  { %1252 = vmatprep.subr.bf16.mxu0 %v1404_v34 }
  0x48   :  { %1227 = vmatpush3.bf16.msra.mxu1 %v1403_v33 }
  0x49   :  { %680 = vmatmul.mubr.bf16.vlgmr.msra.gmra.mxu0 %v1400_v31  ;;  %1309 = vmatprep.subr.bf16.mxu1 %v1429_v54 }
  0x4a   :  { %1253 = vmatpush3.bf16.msra.mxu0 %v1408_v37  ;;  %687 = vmatprep.mubr.bf16.mxu0 %v1411_v40 }
  0x4b   :  { %745 = vmatmul.mubr.bf16.vlgmr.msra.gmra.mxu1 %v1405_v35  ;;  %1254 = vmatprep.subr.bf16.mxu0 %v1409_v38 }
  0x4c   :  { %752 = vmatprep.mubr.bf16.mxu1 %v1415_v43  ;;  %1310 = vmatpush3.bf16.msra.mxu1 %v1429_v54 }
  0x4d   :  { %1343 = vmatprep.subr.bf16.mxu1 %v1458_v13 }
  0x4e   :  { %1255 = vmatpush3.bf16.msra.mxu0 %v1410_v39 }
  0x4f   :  { %1256 = vmatprep.subr.bf16.mxu0 %v1414_v42 }
  0x51   :  { %688 = vmatmul.mubr.bf16.gmra.mxu0 %v1413_v41 }
  0x52   :  { %1257 = vmatpush3.bf16.msra.mxu0 %v1417_v44  ;;  %695 = vmatprep.mubr.bf16.mxu0 %v1421_v48 }
  0x53   :  { %753 = vmatmul.mubr.bf16.gmra.mxu1 %v1418_v45  ;;  %1258 = vmatprep.subr.bf16.mxu0 %v1419_v46 }
  0x54   :  { %760 = vmatprep.mubr.bf16.mxu1 %v1425_v51  ;;  %v1618_v51 = vld [vmem:[%s1650_s2] ss:$0 sm:$0xff] }
  0x56   :  { %1259 = vmatpush3.bf16.msra.mxu0 %v1420_v47 }
  0x57   :  { %1260 = vmatprep.subr.bf16.mxu0 %v1424_v50 }
  0x59   :  { %696 = vmatmul.mubr.bf16.gmra.mxu0 %v1423_v49 }
  0x5a   :  { %1261 = vmatpush3.bf16.msra.mxu0 %v1427_v52  ;;  %703 = vmatprep.mubr.bf16.mxu0 %v1432_v57 }
  0x5b   :  { %761 = vmatmul.mubr.bf16.gmra.mxu1 %v1428_v53  ;;  %1262 = vmatprep.subr.bf16.mxu0 %v1430_v55 }
  0x5c   :  { %768 = vmatprep.mubr.bf16.mxu1 %v1436_v60 }
  0x5e   :  { %1263 = vmatpush3.bf16.msra.mxu0 %v1431_v56 }
  0x5f   :  { %1264 = vmatprep.subr.bf16.mxu0 %v1435_v59 }
  0x61   :  { %704 = vmatmul.mubr.bf16.gmra.mxu0 %v1434_v58 }
  0x62   :  { %1265 = vmatpush3.bf16.msra.mxu0 %v1438_v61  ;;  %809 = vmatprep.mubr.bf16.mxu0 %v1444_v0 }
  0x63   :  { %769 = vmatmul.mubr.bf16.gmra.mxu1 %v1439_v62  ;;  %1266 = vmatprep.subr.bf16.mxu0 %v1440_v63 }
  0x64   :  { %1311 = vmatprep.mubr.msk.bf16.mxu1 %vm634_vm0, %v1445_v1 }
  0x66   :  { %1267 = vmatpush3.bf16.msra.mxu0 %v1441_v2 }
  0x67   :  { %1319 = vmatprep.subr.bf16.mxu0 %v1458_v13 }
  0x69   :  { %810 = vmatmul.mubr.bf16.vlgmr.msra.gmra.mxu0 %v1442_v3 }
  0x6a   :  { %817 = vmatprep.mubr.bf16.mxu0 %v1447_v5  ;;  %1320 = vmatpush3.bf16.msra.mxu0 %v1458_v13 }
  0x6b   :  { %1312 = vmatmul.mubr.msk.bf16.vlgmr.msra.gmra.mxu1 %vm634_vm0, %v1446_v4  ;;  %1321 = vmatprep.subr.bf16.mxu0 %v1459_v14 }
  0x6c   :  { %1315 = vmatprep.mubr.msk.bf16.mxu1 %vm634_vm0, %v1453_v6  ;;  %1351 = vmatpush3.bf16.msra.mxu1 %v1458_v13 }
  0x6d   :  { %1344 = vmatprep.subr.bf16.mxu1 %v1459_v14 }
  0x6e   :  { %1322 = vmatpush3.bf16.msra.mxu0 %v1459_v14 }
  0x6f   :  { %1323 = vmatprep.subr.bf16.mxu0 %v1460_v15 }
  0x70   :  { %1352 = vmatpush3.bf16.msra.mxu1 %v1459_v14 }
  0x71   :  { %818 = vmatmul.mubr.bf16.gmra.mxu0 %v1449_v7  ;;  %1345 = vmatprep.subr.bf16.mxu1 %v1460_v15 }
  0x72   :  { %825 = vmatprep.mubr.bf16.mxu0 %v1450_v8  ;;  %1324 = vmatpush3.bf16.msra.mxu0 %v1460_v15 }
  0x73   :  { %1316 = vmatmul.mubr.msk.bf16.gmra.mxu1 %vm634_vm0, %v1454_v9  ;;  %1325 = vmatprep.subr.bf16.mxu0 %v1461_v16 }
  0x74   :  { %1353 = vmatpush3.bf16.msra.mxu1 %v1460_v15 }
  0x75   :  { %1346 = vmatprep.subr.bf16.mxu1 %v1461_v16 }
  0x76   :  { %1326 = vmatpush3.bf16.msra.mxu0 %v1461_v16 }
  0x77   :  { %1327 = vmatprep.subr.bf16.mxu0 %v1462_v17 }
  0x78   :  { %1354 = vmatpush3.bf16.msra.mxu1 %v1461_v16 }
  0x79   :  { %826 = vmatmul.mubr.bf16.gmra.mxu0 %v1452_v10  ;;  %1347 = vmatprep.subr.bf16.mxu1 %v1462_v17 }
  0x7a   :  { %833 = vmatprep.mubr.bf16.mxu0 %v1455_v11  ;;  %1328 = vmatpush3.bf16.msra.mxu0 %v1462_v17 }
  0x7b   :  { %1329 = vmatprep.subr.bf16.mxu0 %v1463_v18 }
  0x7c   :  { %1355 = vmatpush3.bf16.msra.mxu1 %v1462_v17 }
  0x7d   :  { %1348 = vmatprep.subr.bf16.mxu1 %v1463_v18 }
  0x7e   :  { %1330 = vmatpush3.bf16.msra.mxu0 %v1463_v18 }
  0x7f   :  { %1331 = vmatprep.subr.bf16.mxu0 %v1464_v19 }
  0x80   :  { %1356 = vmatpush3.bf16.msra.mxu1 %v1463_v18 }
  0x81   :  { %834 = vmatmul.mubr.bf16.gmra.mxu0 %v1457_v12  ;;  %1349 = vmatprep.subr.bf16.mxu1 %v1464_v19 }
  0x82   :  { %1332 = vmatpush3.bf16.msra.mxu0 %v1464_v19 }
  0x83   :  { %1333 = vmatprep.subr.bf16.mxu0 %v1465_v20 }
  0x84   :  { %1357 = vmatpush3.bf16.msra.mxu1 %v1464_v19 }
  0x85   :  { %1350 = vmatprep.subr.bf16.mxu1 %v1465_v20 }
  0x86   :  { %1334 = vmatpush3.bf16.msra.mxu0 %v1465_v20 }
  0x88   :  { %1358 = vmatpush3.bf16.msra.mxu1 %v1465_v20 }
 0x109   :  { %v1188_v21 = vpop.f32.mrf.mxu0 }
 0x10b   :  { %v1189_v22 = vpop.f32.mrf.mxu0  ;;  %v1228_v23 = vpop.f32.mrf.mxu1 }
 0x10c   :  { %v1190_v49 = vadd.f32 %v1189_v22, %v1188_v21 }
 0x10d   :  { %v1191_v24 = vpop.f32.mrf.mxu0  ;;  %v1229_v25 = vpop.f32.mrf.mxu1 }
 0x10e   :  { %v682_v54 = vadd.f32 %v1190_v49, %v1618_v51  ;;  %v1230_v55 = vadd.f32 %v1229_v25, %v1228_v23 }
 0x10f   :  { %v1192_v26 = vpop.f32.mrf.mxu0  ;;  %v1231_v27 = vpop.f32.mrf.mxu1 }
 0x110   :  { %v1193_v56 = vadd.f32 %v1192_v26, %v1191_v24  ;;  %v747_v62 = vadd.f32 %v1230_v55, %v682_v54 }
 0x111   :  { %v1194_v28 = vpop.f32.mrf.mxu0  ;;  %v1232_v29 = vpop.f32.mrf.mxu1 }
 0x112   :  { %v685_v63 = vadd.f32 %v1193_v56, %v1618_v51  ;;  %v1233_v0 = vadd.f32 %v1232_v29, %v1231_v27 }
 0x113   :  { %v1195_v30 = vpop.f32.mrf.mxu0  ;;  %v1234_v31 = vpop.f32.mrf.mxu1 }
 0x114   :  { %v1196_v60 = vadd.f32 %v1195_v30, %v1194_v28  ;;  %v750_v9 = vadd.f32 %v1233_v0, %v685_v63 }
 0x115   :  { %v1197_v32 = vpop.f32.mrf.mxu0  ;;  %v1235_v33 = vpop.f32.mrf.mxu1 }
 0x116   :  { %v690_v6 = vadd.f32 %v1196_v60, %v1618_v51  ;;  %v1236_v7 = vadd.f32 %v1235_v33, %v1234_v31 }
 0x117   :  { %v1198_v34 = vpop.f32.mrf.mxu0  ;;  %v1237_v35 = vpop.f32.mrf.mxu1 }
 0x118   :  { %v1199_v10 = vadd.f32 %v1198_v34, %v1197_v32  ;;  %v755_v16 = vadd.f32 %v1236_v7, %v690_v6 }
 0x119   :  { %v1200_v36 = vpop.f32.mrf.mxu0  ;;  %v1238_v37 = vpop.f32.mrf.mxu1 }
 0x11a   :  { %v693_v19 = vadd.f32 %v1199_v10, %v1618_v51  ;;  %v1239_v20 = vadd.f32 %v1238_v37, %v1237_v35 }
 0x11b   :  { %v1201_v38 = vpop.f32.mrf.mxu0  ;;  %v1240_v39 = vpop.f32.mrf.mxu1 }
 0x11c   :  { %v1202_v17 = vadd.f32 %v1201_v38, %v1200_v36  ;;  %v758_v31 = vadd.f32 %v1239_v20, %v693_v19 }
 0x11d   :  { %v1203_v40 = vpop.f32.mrf.mxu0  ;;  %v1241_v41 = vpop.f32.mrf.mxu1 }
 0x11e   :  { %v698_v28 = vadd.f32 %v1202_v17, %v1618_v51  ;;  %v1242_v29 = vadd.f32 %v1241_v41, %v1240_v39 }
 0x11f   :  { %v1204_v42 = vpop.f32.mrf.mxu0  ;;  %v1605_v43 = vpop.f32.mrf.mxu1 }
 0x120   :  { %v1205_v32 = vadd.f32 %v1204_v42, %v1203_v40  ;;  %v763_v35 = vadd.f32 %v1242_v29, %v698_v28 }
 0x121   :  { %v1206_v44 = vpop.f32.mrf.mxu0  ;;  %v1607_v45 = vpop.f32.mrf.mxu1 }
 0x122   :  { %v701_v56 = vadd.f32 %v1205_v32, %v1618_v51 }
 0x123   :  { %v1207_v46 = vpop.f32.mrf.mxu0  ;;  %v1609_v47 = vpop.f32.mrf.mxu1 }
 0x124   :  { %v1208_v37 = vadd.f32 %v1207_v46, %v1206_v44 }
 0x125   :  { %v1611_v48 = vpop.f32.mrf.mxu0  ;;  %v1613_v50 = vpop.f32.mrf.mxu1 }
 0x126   :  { %v706_v63 = vadd.f32 %v1208_v37, %v1618_v51 }
 0x127   :  { %v1620_v52 = vpop.f32.mrf.mxu0  ;;  %v1622_v53 = vpop.f32.mrf.mxu1 }
 0x128   :  { %v1211_v46 = vadd.f32 %v1620_v52, %v1611_v48 }
 0x129   :  { %v1625_v57 = vpop.f32.mrf.mxu1  ;;  %v1268_v58 = vpop.f32.mrf.mxu0 }
 0x12a   :  { %v709_v7 = vadd.f32 %v1211_v46, %v1618_v51 }
 0x12b   :  { %v1313_v59 = vpop.f32.mrf.mxu1  ;;  %v1269_v61 = vpop.f32.mrf.mxu0 }
 0x12c   :  { %v1270_v1 = vadd.f32 %v1269_v61, %v1268_v58  ;;  %v1245_v58 = vadd.f32 %v1607_v45, %v1605_v43 }
 0x12d   :  { %v876_v2 = vpop.f32.mrf.mxu1  ;;  %v1271_v3 = vpop.f32.mrf.mxu0 }
 0x12e   :  { %v812_v4 = vadd.f32 %v1270_v1, %v747_v62  ;;  %v766_v44 = vadd.f32 %v1245_v58, %v701_v56 }
 0x12f   :  { %v1314_v5 = vpop.f32.mrf.mxu1  ;;  %v1272_v8 = vpop.f32.mrf.mxu0 }
 0x130   :  { %v1273_v11 = vadd.f32 %v1272_v8, %v1271_v3  ;;  %v877_v14 = vadd.f32 %v876_v2, %v812_v4  ;;  %v1251_v8 = vadd.f32 %v1625_v57, %v1622_v53  ;;  %v1163_v53 = vld [vmem:[%s1652_s4] ss:$0 sm:$0xff]  ;;  %s1526_s4 = scalar_lea.vmem %s1069_s13, 1024 }
 0x131   :  { %v1274_v12 = vpop.f32.mrf.mxu0  ;;  %v879_v13 = vpop.f32.mrf.mxu1  ;;  %p1527_p1 = scmp.ne.s32.totalorder %s1069_s13, %s1526_s4  ;;  %p1532_p3 = scmp.lt.s32.totalorder %s1526_s4, %s1526_s4 }
 0x132   :  { %v815_v15 = vadd.f32 %v1273_v11, %v750_v9  ;;  %v907_v25 = vmax.f32 %v877_v14, 0.0 }
 0x133   :  { %v1275_v18 = vpop.f32.mrf.mxu0  ;;  %v1317_v24 = vpop.f32.mrf.mxu1  ;;  %p1533_p4 = por %p1532_p3, %p1531_p2 }
 0x134   :  { %v1276_v21 = vadd.f32 %v1275_v18, %v1274_v12  ;;  %v880_v22 = vadd.f32 %v879_v13, %v815_v15  ;;  %v774_v12 = vadd.f32 %v1251_v8, %v709_v7 }
 0x135   :  { %v1277_v23 = vpop.f32.mrf.mxu0  ;;  %v892_v38 = vpop.f32.mrf.mxu1  ;;  %p1534_p5 = pnand %p1533_p4, %p1527_p1 }
 0x136   :  { %v820_v26 = vadd.f32 %v1276_v21, %v755_v16  ;;  %v908_v27 = vmax.f32 %v880_v22, 0.0 }
 0x137   :  { %v1278_v30 = vpop.f32.mrf.mxu0  ;;  %v1318_v61 = vpop.f32.mrf.mxu1 }
 0x138   :  { %v915_v33 = vpack.c.bf16 %v908_v27, %v907_v25  ;;  %v1279_v34 = vadd.f32 %v1278_v30, %v1277_v23  ;;  %v885_v49 = vadd.f32 %v1313_v59, %v820_v26  ;;  %v1248_v59 = vadd.f32 %v1613_v50, %v1609_v47 }
 0x139   :  { %v1280_v36 = vpop.f32.mrf.mxu0  ;;  %v895_v45 = vpop.f32.mrf.mxu1 }
 0x13a   :  { %v823_v54 = vadd.f32 %v1279_v34, %v758_v31  ;;  %1335 = vmatprep.mubr.bf16.mxu0 %v915_v33  ;;  %v909_v40 = vmax.f32 %v885_v49, 0.0 }
 0x13b   :  { %v1281_v55 = vpop.f32.mrf.mxu0 }
 0x13c   :  { %v888_v60 = vadd.f32 %v1314_v5, %v823_v54  ;;  %v1282_v39 = vadd.f32 %v1281_v55, %v1280_v36  ;;  %v771_v5 = vadd.f32 %v1248_v59, %v706_v63 }
 0x13d   :  { %v1283_v41 = vpop.f32.mrf.mxu0 }
 0x13e   :  { %v910_v42 = vmax.f32 %v888_v60, 0.0  ;;  %v828_v62 = vadd.f32 %v1282_v39, %v763_v35 }
 0x13f   :  { %v1284_v0 = vpop.f32.mrf.mxu0 }
 0x140   :  { %v916_v1 = vpack.c.bf16 %v910_v42, %v909_v40  ;;  %v1285_v2 = vadd.f32 %v1284_v0, %v1283_v41  ;;  %v893_v3 = vadd.f32 %v892_v38, %v828_v62 }
 0x141   :  { %v1286_v43 = vpop.f32.mrf.mxu0 }
 0x142   :  { %1336 = vmatmul.mubr.bf16.vlgmr.msra.gmra.mxu0 %v916_v1  ;;  %v831_v4 = vadd.f32 %v1285_v2, %v766_v44  ;;  %v911_v10 = vmax.f32 %v893_v3, 0.0 }
 0x143   :  { %v1287_v6 = vpop.f32.mrf.mxu0 }
 0x144   :  { %v1288_v47 = vadd.f32 %v1287_v6, %v1286_v43  ;;  %v896_v50 = vadd.f32 %v895_v45, %v831_v4 }
 0x145   :  { %v1289_v9 = vpop.f32.mrf.mxu0 }
 0x146   :  { %v836_v11 = vadd.f32 %v1288_v47, %v771_v5  ;;  %v912_v48 = vmax.f32 %v896_v50, 0.0 }
 0x147   :  { %v1290_v52 = vpop.f32.mrf.mxu0 }
 0x148   :  { %v917_v13 = vpack.c.bf16 %v912_v48, %v911_v10  ;;  %v1291_v14 = vadd.f32 %v1290_v52, %v1289_v9  ;;  %v901_v15 = vadd.f32 %v1317_v24, %v836_v11 }
 0x14a   :  { %v839_v16 = vadd.f32 %v1291_v14, %v774_v12  ;;  %1339 = vmatprep.mubr.bf16.mxu1 %v917_v13  ;;  %v913_v18 = vmax.f32 %v901_v15, 0.0 }
 0x14c   :  { %v904_v17 = vadd.f32 %v1318_v61, %v839_v16 }
 0x14e   :  { %v914_v19 = vmax.f32 %v904_v17, 0.0 }
 0x150   :  { %v918_v51 = vpack.c.bf16 %v914_v19, %v913_v18 }
 0x152   :  { %1340 = vmatmul.mubr.bf16.vlgmr.msra.gmra.mxu1 %v918_v51 }
 0x202   :  { %v1337_v57 = vpop.f32.mrf.mxu0 }
 0x203   :  { %v1033_v20 = vadd.f32 %v1337_v57, %v1163_v53 }
 0x204   :  { %v1024_v21 = vpop.f32.mrf.mxu0 }
 0x205   :  { %1057 = vst [vmem:[#allocation8 + $0x10] sm:$0xff] %v1033_v20  ;;  %v1025_v22 = vadd.f32 %v1163_v53, %v1024_v21 }
 0x206   :  { %v1338_v23 = vpop.f32.mrf.mxu0 }
 0x207   :  { %1055 = vst [vmem:[#allocation8] sm:$0xff] %v1025_v22  ;;  %v1036_v25 = vadd.f32 %v1338_v23, %v1163_v53 }
 0x208   :  { %v1027_v24 = vpop.f32.mrf.mxu0 }
 0x209   :  { %1058 = vst [vmem:[#allocation8 + $0x18] sm:$0xff] %v1036_v25  ;;  %v1028_v26 = vadd.f32 %v1163_v53, %v1027_v24 }
 0x20b   :  { %1056 = vst [vmem:[#allocation8 + $0x8] sm:$0xff] %v1028_v26 }
 0x212   :  { %v1341_v27 = vpop.f32.mrf.mxu1 }
 0x213   :  { %v1049_v28 = vadd.f32 %v1341_v27, %v1163_v53 }
 0x214   :  { %v1040_v29 = vpop.f32.mrf.mxu1 }
 0x215   :  { %1061 = vst [vmem:[#allocation8 + $0x30] sm:$0xff] %v1049_v28  ;;  %v1041_v30 = vadd.f32 %v1163_v53, %v1040_v29 }
 0x216   :  { %v1342_v31 = vpop.f32.mrf.mxu1 }
 0x217   :  { %1059 = vst [vmem:[#allocation8 + $0x20] sm:$0xff] %v1041_v30  ;;  %v1052_v32 = vadd.f32 %v1342_v31, %v1163_v53 }
 0x218   :  { %v1043_v33 = vpop.f32.mrf.mxu1 }
 0x219   :  { %1062 = vst [vmem:[#allocation8 + $0x38] sm:$0xff] %v1052_v32  ;;  %v1044_v34 = vadd.f32 %v1163_v53, %v1043_v33 }
 0x21b   :  { %1060 = vst [vmem:[#allocation8 + $0x28] sm:$0xff] %v1044_v34 }
 0x21c   :  { %1537 = shalt.err (!%p1534_p5)
}
 0x21d   :  { %s1560_s14 = smov 128   ;;  %s1561_s15 = smov 8  }
 0x21e   :  { %1074 = dma.vmem_to_hbm [thread:$0]  %s1069_s13, 1024, %s1653_s5, [#allocation4], %s1560_s14, %s1560_s14, %s1561_s15  }
 0x21f   :  { %1550 = dma.done.wait [#allocation4], 1024  }
 0x220   :  { %1551 = vsyncadd [#allocation4], 4294966272 }
 0x221   :  { %1078 = vsyncpa [#allocation3], 1 }
 0x222   :  { %1079 = vsyncpa [#allocation6], 1 }
 0x223   :  { %1080 = vsyncpa [#allocation4], 1 }

</bundles_post_ra>
